<compile_context>
chip_gen: v5e
topology: v5e:2x2
jax: 0.10.0
libtpu: 0.0.40
codegen_flags: <defaults>
</compile_context>

<pallas_src>
import functools

import jax
import jax.numpy as jnp
from jax.experimental import pallas as pl
from jax.experimental.pallas import tpu as pltpu

_MIB = 1024 * 1024


def _vmem_capacity_bytes():
    """Best-effort physical VMEM capacity (per TensorCore), with fallbacks."""
    try:
        info = pltpu.get_tpu_info()
        cap = getattr(info, "vmem_capacity_bytes", None)
        if cap:
            return int(cap)
    except Exception:
        pass
    try:
        kind = jax.devices()[0].device_kind.lower()
        if "7" in kind:          # v7x-class parts: 64 MiB per TC
            return 64 * _MIB
    except Exception:
        pass
    return 128 * _MIB            # v5e / v6e


def _round_up(x, m):
    return ((x + m - 1) // m) * m


def _round_down(x, m):
    return (x // m) * m


def _mean_dim1_single_kernel(x_ref, o_ref, *, inv_s):
    # Whole S fits one block: reduce and write directly (no scratch round-trip).
    o_ref[...] = (jnp.sum(x_ref[...], axis=1, dtype=jnp.float32) * inv_s
                  ).astype(o_ref.dtype)


def _mean_dim1_kernel(x_ref, o_ref, acc_ref, *, inv_s, rem):
    # x_ref: (Bt, Ts, Td) tile, o_ref: (Bt, Td) tile, acc_ref: (Bt, Td) f32.
    # `rem` = number of valid rows of the LAST S tile (== Ts when S % Ts == 0).
    k = pl.program_id(2)
    last = pl.num_programs(2) - 1

    @pl.when(k == 0)
    def _init():
        acc_ref[...] = jnp.zeros_like(acc_ref)

    ts = x_ref.shape[1]
    if rem == ts:
        # Divisible S: every tile fully valid.
        acc_ref[...] += jnp.sum(x_ref[...], axis=1, dtype=jnp.float32)
    else:
        @pl.when(k < last)
        def _body():
            acc_ref[...] += jnp.sum(x_ref[...], axis=1, dtype=jnp.float32)

        @pl.when(k == last)
        def _tail():
            # Static slice: only the valid rows of the padded tail block.
            acc_ref[...] += jnp.sum(x_ref[:, :rem, :], axis=1, dtype=jnp.float32)

    @pl.when(k == last)
    def _finalize():
        # Single divide by the FULL sequence length.
        o_ref[...] = (acc_ref[...] * inv_s).astype(o_ref.dtype)


def mean_dim1(x, *, vmem_input_budget_bytes=None):
    """x: (B, S, D) -> (B, D) mean over axis 1, f32 accumulation."""
    B, S, D = x.shape
    itemsize = jnp.dtype(x.dtype).itemsize
    # Sublane packing: f32 -> 8, bf16 -> 16, int8/fp8 -> 32 rows per vreg.
    sub_mult = {4: 8, 2: 16, 1: 32}.get(itemsize, 8)

    # --- generation-aware VMEM budgets -------------------------------------
    vmem_cap = _vmem_capacity_bytes()
    if vmem_cap <= 64 * _MIB:
        # v7x-class: 3.2 TB/s HBM but only 64 MiB VMEM -> big tiles, tight cap.
        default_budget = 10 * _MIB
        vmem_limit_cap = 44 * _MIB
    else:
        # v5e / v6e: 128 MiB VMEM -> let double-buffered tiles grow.
        default_budget = 16 * _MIB
        vmem_limit_cap = 90 * _MIB
    budget = int(vmem_input_budget_bytes or default_budget)

    # --- tile selection -----------------------------------------------------
    # Batch tile: sublane-dense output rows (multiple of 8/sub_mult, or full B).
    bt_target = max(8, sub_mult)
    Bt = B if B <= bt_target else bt_target

    # Feature tile: keep full D (contiguous runs, one S walk per batch tile)
    # whenever a minimal (Bt, sub_mult, D) block fits the budget; otherwise
    # split into lane-dense 128-multiples.
    if D <= 128 or Bt * sub_mult * D * itemsize <= budget:
        Td = D
    else:
        Td = max(128, _round_down(budget // (Bt * sub_mult * itemsize), 128))
        Td = min(Td, _round_up(D, 128))

    # Megacore: guarantee >= 2 "parallel" tiles so v7x's second TensorCore
    # gets work (costs one extra ~0.35us grid step on single-core parts).
    if pl.cdiv(B, Bt) * pl.cdiv(D, Td) == 1:
        if B > 8:
            Bt = _round_up(pl.cdiv(B, 2), 8)
        elif D > 128:
            Td = _round_up(pl.cdiv(D, 2), 128)

    # Sequence tile: spend the remaining per-buffer budget on S.
    ts_budget = budget // max(1, Bt * Td * itemsize)
    ts_target = max(sub_mult, _round_down(ts_budget, sub_mult))
    Ts = S if ts_target >= S else ts_target

    grid_b = pl.cdiv(B, Bt)
    grid_d = pl.cdiv(D, Td)
    grid_s = pl.cdiv(S, Ts)
    rem = S - (grid_s - 1) * Ts          # valid rows in the last S tile (static)

    # --- VMEM limit / cost estimate ------------------------------------------
    block_in = Bt * Ts * Td * itemsize
    block_out = Bt * Td * itemsize
    need = 2 * block_in + 2 * block_out + Bt * Td * 4   # dbl-buf in/out + f32 acc
    vmem_limit = min(max(2 * need, 32 * _MIB), vmem_limit_cap)
    vmem_limit = int(max(vmem_limit, need + 2 * _MIB))

    cost = pl.CostEstimate(
        flops=B * S * D,
        transcendentals=0,
        bytes_accessed=B * S * D * itemsize + B * D * itemsize,
    )

    if grid_s == 1:
        # Whole reduction in one step: skip scratch + pl.when entirely.
        kernel = functools.partial(_mean_dim1_single_kernel, inv_s=1.0 / S)
        grid_spec = pltpu.PrefetchScalarGridSpec(
            num_scalar_prefetch=0,
            grid=(grid_b, grid_d),
            in_specs=[pl.BlockSpec((Bt, S, Td), lambda b, d: (b, 0, d))],
            out_specs=pl.BlockSpec((Bt, Td), lambda b, d: (b, d)),
        )
        dims = ("parallel", "parallel")
    else:
        kernel = functools.partial(_mean_dim1_kernel, inv_s=1.0 / S, rem=rem)
        grid_spec = pltpu.PrefetchScalarGridSpec(
            num_scalar_prefetch=0,
            grid=(grid_b, grid_d, grid_s),
            in_specs=[pl.BlockSpec((Bt, Ts, Td), lambda b, d, k: (b, k, d))],
            out_specs=pl.BlockSpec((Bt, Td), lambda b, d, k: (b, d)),
            scratch_shapes=[pltpu.VMEM((Bt, Td), jnp.float32)],
        )
        dims = ("parallel", "parallel", "arbitrary")

    return pl.pallas_call(
        kernel,
        out_shape=jax.ShapeDtypeStruct((B, D), x.dtype),
        grid_spec=grid_spec,
        compiler_params=pltpu.CompilerParams(
            dimension_semantics=dims,
            vmem_limit_bytes=vmem_limit,
        ),
        cost_estimate=cost,
    )(x)


def sum_cap_encoder_layer(x):
    """Equivalent of SumCapEncoderLayer.forward: (x, None, x.mean(dim=1))."""
    # TODO(synk): the biggest win is fusing this running f32 sum into whichever
    # adjacent kernel already streams x through VMEM; standalone kernel kept as
    # the general fallback.
    return x, None, mean_dim1(x)


if __name__ == "__main__":
    key = jax.random.PRNGKey(0)

    # Encoder-layer-like input: (batch, seq, d_model).
    B, S, D = 2, 8, 32
    x = jax.random.normal(key, (B, S, D), dtype=jnp.float32)

    out_x, none_out, mean_out = sum_cap_encoder_layer(x)
    jax.block_until_ready(out_x)
    jax.block_until_ready(mean_out)

    ref_mean = jnp.mean(x, axis=1)
    assert none_out is None
    assert out_x.shape == (B, S, D)
    assert mean_out.shape == (B, D)
    assert jnp.allclose(out_x, x)
    assert jnp.allclose(mean_out, ref_mean, atol=1e-6, rtol=1e-6)

    # Multi-step reduction path (tiny budget forces Ts < S -> init / accumulate /
    # finalize across the "arbitrary" S axis, plus the megacore D split).
    B2, S2, D2 = 8, 64, 256
    x2 = jax.random.normal(jax.random.PRNGKey(1), (B2, S2, D2), dtype=jnp.float32)
    m2 = mean_dim1(x2, vmem_input_budget_bytes=128 * 1024)
    jax.block_until_ready(m2)
    assert jnp.allclose(m2, jnp.mean(x2, axis=1), atol=1e-5, rtol=1e-5)

    # Non-divisible S + bf16 path (padded tail tile handled via static slice).
    B3, S3, D3 = 2, 40, 128
    x3 = jax.random.normal(jax.random.PRNGKey(2), (B3, S3, D3), dtype=jnp.bfloat16)
    m3 = mean_dim1(x3, vmem_input_budget_bytes=8 * 1024)
    jax.block_until_ready(m3)
    ref3 = jnp.mean(x3.astype(jnp.float32), axis=1)
    assert jnp.allclose(m3.astype(jnp.float32), ref3, atol=2e-2, rtol=2e-2)

    print("KERNEL_OK")
</pallas_src>

<mosaic_0001>
module attributes {stable_mosaic.version = 11 : i64} {
  func.func @_mean_dim1_single_kernel(%arg0: i32, %arg1: i32, %arg2: memref<2x8x32xf32, #tpu.memory_space<vmem>>, %arg3: memref<2x32xf32, #tpu.memory_space<vmem>>) attributes {dimension_semantics = [#tpu.dimension_semantics<parallel>, #tpu.dimension_semantics<parallel>], iteration_bounds = array<i64: 1, 1>, scalar_prefetch = 0 : i64, scratch_operands = 0 : i64, tpu.core_type = #tpu.core_type<tc>, window_params = [{transform_indices = @transform_0, window_bounds = array<i64: 2, 8, 32>}, {transform_indices = @transform_1, window_bounds = array<i64: 2, 32>}]} {
    %c0 = arith.constant 0 : index
    %c0_0 = arith.constant 0 : index
    %c0_1 = arith.constant 0 : index
    %0 = vector.load %arg2[%c0, %c0_0, %c0_1] : memref<2x8x32xf32, #tpu.memory_space<vmem>>, vector<2x8x32xf32>
    %cst = arith.constant dense<0.000000e+00> : vector<2x32xf32>
    %1 = vector.multi_reduction <add>, %0, %cst [1] : vector<2x8x32xf32> to vector<2x32xf32>
    %cst_2 = arith.constant 1.250000e-01 : f32
    %2 = vector.broadcast %cst_2 : f32 to vector<2x32xf32>
    %3 = arith.mulf %1, %2 : vector<2x32xf32>
    %c0_3 = arith.constant 0 : index
    %c0_4 = arith.constant 0 : index
    %4 = vector.load %arg3[%c0_3, %c0_4] : memref<2x32xf32, #tpu.memory_space<vmem>>, vector<2x32xf32>
    tpu.vector_store %arg3[%c0_3, %c0_4], %3 {strides = array<i32>} : memref<2x32xf32, #tpu.memory_space<vmem>>, vector<2x32xf32>,
    return
  }
  func.func @transform_0(%arg0: i32, %arg1: i32) -> (i32, i32, i32) {
    %c0_i32 = arith.constant 0 : i32
    %c0_i32_0 = arith.constant 0 : i32
    return %arg0, %c0_i32, %arg1 : i32, i32, i32
  }
  func.func @transform_1(%arg0: i32, %arg1: i32) -> (i32, i32) {
    %c0_i32 = arith.constant 0 : i32
    return %arg0, %arg1 : i32, i32
  }
}

</mosaic_0001>

<bundles_post_ra>
// kernel: tpu_custom_call.1
= control target key start
LH: loop header
LB: loop body
LE: loop exit
PB: predicated region body
PF: predicated region fallthrough
CT: control target
= control target key end

     0   :  { %6 = vsyncpa [#allocation3], 0  ;;  %s144_s0 = inlined_call_operand.hbm [shape: f32[2,8,32], index: 0, kind: input, shape index: {}]   ;;  %s145_s1 = inlined_call_operand.hbm [shape: f32[2,32], index: 1, kind: output, shape index: {}]  }
   0x1   :  { %7 = vsyncpa [#allocation4], 0  ;;  %s12_s8 = sshll.u32 %s144_s0, 4  ;;  %s124_s9 = smov [#allocation2]   ;;  %s13_s8 = int_to_ptr.hbm [resolvable:$true] %s12_s8 }
   0x2   :  { %s14_s10 = sshll.u32 %s124_s9, 4  ;;  %s125_s11 = smov 128   ;;  %s15_s10 = int_to_ptr.vmem [resolvable:$true] %s14_s10 }
   0x3   :  { %s126_s12 = smov 8  }
   0x4   :  { %20 = dma.hbm_to_vmem [thread:$0]  %s13_s8, 256, %s15_s10, [#allocation3], %s125_s11, %s125_s11, %s126_s12  }
   0x5   :  { %120 = dma.done.wait [#allocation3], 256  }
   0x6   :  { %121 = vsyncadd [#allocation3], 4294967040  ;;  %vm27_vm0 = vcmask 261120   ;;  %v25_v0 = vld [vmem:[#allocation2] sm:$0xff]  ;;  %v26_v1 = vld [vmem:[#allocation2 + $0x8] sm:$0xff]  ;;  %s127_s0 = smov [#allocation5]  }
   0x7   :  { %v28_v2 = vsel %vm27_vm0, %v25_v0, 0.0  ;;  %v35_v3 = vsel %vm27_vm0, %v26_v1, 0.0  ;;  %s56_s13 = sshll.u32 %s127_s0, 4  ;;  %s58_s16 = sshll.u32 %s145_s1, 4  ;;  %vm46_vm1 = vcmask 1041409   ;;  %vm49_vm2 = vcmask 254976   ;;  %s57_s13 = int_to_ptr.vmem [resolvable:$true] %s56_s13  ;;  %s59_s16 = int_to_ptr.hbm [resolvable:$true] %s58_s16 }
   0x8   :  { %v29_v4 = vrot.slane %v28_v2, 4  ;;  %v36_v5 = vrot.slane %v35_v3, 4 }
   0xa   :  { %v30_v6 = vadd.f32 %v29_v4, %v28_v2  ;;  %v37_v7 = vadd.f32 %v36_v5, %v35_v3 }
   0xc   :  { %v31_v8 = vrot.slane %v30_v6, 2  ;;  %v38_v9 = vrot.slane %v37_v7, 2 }
   0xe   :  { %v32_v10 = vadd.f32 %v31_v8, %v30_v6  ;;  %v39_v11 = vadd.f32 %v38_v9, %v37_v7 }
  0x10   :  { %v33_v12 = vrot.slane %v32_v10, 1  ;;  %v40_v13 = vrot.slane %v39_v11, 1 }
  0x12   :  { %v34_v14 = vadd.f32 %v33_v12, %v32_v10  ;;  %v41_v15 = vadd.f32 %v40_v13, %v39_v11 }
  0x14   :  { %v42_v16 = vmul.f32 0.125, %v34_v14  ;;  %v43_v17 = vmul.f32 0.125, %v41_v15 }
  0x16   :  { %v47_v18 = vsel %vm46_vm1, %v43_v17, %v42_v16 }
  0x17   :  { %50 = vst.msk [vmem:[#allocation5] sm:$0x3] %vm49_vm2, %v47_v18 }
  0x18   :  { %61 = dma.vmem_to_hbm [thread:$0]  %s57_s13, 32, %s59_s16, [#allocation4]  }
  0x19   :  { %122 = dma.done.wait [#allocation4], 32  }
  0x1a   :  { %123 = vsyncadd [#allocation4], 4294967264 }
  0x1b   :  { %66 = vsyncpa [#allocation3], 1 }
  0x1c   :  { %67 = vsyncpa [#allocation4], 1 }

</bundles_post_ra>
